<compile_context>
chip_gen: v7x
topology: tpu7x:2x2x1
jax: 0.10.0
libtpu: 0.0.40
codegen_flags: <defaults>
</compile_context>

<pallas_src>
import functools

import jax
import jax.numpy as jnp
from jax.experimental import pallas as pl
from jax.experimental.pallas import tpu as pltpu

_F_NORMALIZE_EPS = 1e-12                    # torch.nn.functional.normalize default eps
_DEFAULT_VMEM_BUDGET = 28 * 1024 * 1024     # target working set (2 in-bufs + acc + out)
_DEFAULT_VMEM_LIMIT = 48 * 1024 * 1024      # explicit scoped-VMEM limit for Mosaic
_LANE = 128
_MAX_LANE_GROUPS = 256                      # caps the statically-unrolled accumulate loop


def _round_up(a, b):
    return -(-a // b) * b


def _accumulate(x_ref, acc_ref, *, n_groups, group, valid):
    """acc += sum over 128-lane groups of x_ref[..., :valid].  Pure vld + VPU adds."""
    tn, c, _ = acc_ref.shape
    # Keep a few independent partials to break the dependent-add chain, but cap the
    # live-vreg footprint (~16 vregs) so we never spill.
    vregs_per_partial = tn * (-(-c // 8)) * (-(-group // _LANE))
    n_partials = max(1, min(4, n_groups, 16 // max(1, vregs_per_partial)))
    partials = [jnp.zeros(acc_ref.shape, jnp.float32) for _ in range(n_partials)]
    for q in range(n_groups):
        lo = q * group
        if lo >= valid:          # fully out-of-range lane group (static): skip
            break
        sl = x_ref[:, :, lo:lo + group].astype(jnp.float32)
        if lo + group > valid:   # partially valid group (static): mask the tail lanes
            lane = jax.lax.broadcasted_iota(jnp.int32, acc_ref.shape, 2)
            sl = jnp.where(lane < (valid - lo), sl, 0.0)
        partials[q % n_partials] = partials[q % n_partials] + sl
    total = partials[0]
    for p in partials[1:]:
        total = total + p
    acc_ref[...] += total


def _gap_kernel(x_ref, o_ref, acc_ref, *, hw, ts, n_k, group, inv_hw):
    """x_ref: (tn, C, ts) block; o_ref: (tn, C); acc_ref: (tn, C, group) f32 scratch."""
    k = pl.program_id(1)
    n_groups = ts // group
    rem = hw - (n_k - 1) * ts                 # valid spatial elements in the last block

    @pl.when(k == 0)
    def _():
        acc_ref[...] = jnp.zeros_like(acc_ref)

    if rem == ts:                             # ts divides hw: every block is full
        _accumulate(x_ref, acc_ref, n_groups=n_groups, group=group, valid=ts)
    else:
        @pl.when(k < n_k - 1)
        def _():
            _accumulate(x_ref, acc_ref, n_groups=n_groups, group=group, valid=ts)

        @pl.when(k == n_k - 1)
        def _():
            _accumulate(x_ref, acc_ref, n_groups=n_groups, group=group, valid=rem)

    @pl.when(k == n_k - 1)
    def _():
        # Single cross-lane reduce + mean + L2 normalize, once per row block.
        pooled = jnp.sum(acc_ref[...], axis=-1) * inv_hw              # (tn, C) mean
        sq = jnp.sum(pooled * pooled, axis=-1, keepdims=True)         # (tn, 1)
        # x / max(||x||, eps) == x * rsqrt(max(||x||^2, eps^2))  (EUP rsqrt)
        inv_norm = jax.lax.rsqrt(
            jnp.maximum(sq, _F_NORMALIZE_EPS * _F_NORMALIZE_EPS))
        o_ref[...] = (pooled * inv_norm).astype(o_ref.dtype)


def _choose_tiles(n, c, hw, itemsize, budget):
    """Pick (tn, ts) using the PADDED VMEM footprint, not logical bytes."""
    sub = {4: 8, 2: 16, 1: 32}.get(itemsize, 8)    # sublane tile for the input dtype
    ru = _round_up

    def in_block_bytes(tn, ts):                    # one pipelined input buffer, padded
        return tn * ru(c, sub) * ru(ts, _LANE) * itemsize

    def fixed_bytes(tn):                           # f32 accumulator + 2x output block
        acc = tn * ru(c, 8) * _LANE * 4
        out = ru(tn, sub) * ru(c, _LANE) * itemsize
        return acc + 2 * out

    if hw <= _LANE:
        ts_cap = hw                                # full (legal) last dim, single step
    else:
        ts_cap = min((hw // _LANE) * _LANE, _MAX_LANE_GROUPS * _LANE)

    def best_ts(tn):
        if hw <= _LANE:
            ts = hw
            ok = fixed_bytes(tn) + 2 * in_block_bytes(tn, ts) <= budget
            return ts if ok else None
        avail = budget - fixed_bytes(tn)
        per_group = 2 * tn * ru(c, sub) * _LANE * itemsize   # double-buffered 128 lanes
        groups = avail // per_group
        if groups < 1:
            return None
        return int(min(ts_cap, groups * _LANE))

    # Legal sample tiles: output block (tn, C) needs tn % 8 == 0 or tn == N.
    cands = sorted(set(range(8, n + 1, 8)) | {n})
    feasible = [(tn, best_ts(tn)) for tn in cands]
    feasible = [(tn, ts) for tn, ts in feasible if ts is not None]
    if not feasible:
        # Correctness over VMEM economy: smallest legal row block, minimal spatial tile.
        return cands[0], (hw if hw <= _LANE else _LANE)
    # Prefer >= 2 row blocks (keeps both v7x TensorCores busy), then the biggest block.
    multi = [(tn, ts) for tn, ts in feasible if -(-n // tn) >= 2]
    pool = multi if multi else feasible
    return max(pool, key=lambda p: (in_block_bytes(p[0], p[1]), p[0]))


def gap_pool(x, *, vmem_budget_bytes=_DEFAULT_VMEM_BUDGET,
             vmem_limit_bytes=_DEFAULT_VMEM_LIMIT):
    """x: (N, C, H, W) -> (N, C), matching GAPool.forward."""
    n, c, h, w = x.shape
    hw = h * w
    x3 = x.reshape(n, c, hw)
    itemsize = jnp.dtype(x.dtype).itemsize

    tn, ts = _choose_tiles(n, c, hw, itemsize, vmem_budget_bytes)
    n_row = pl.cdiv(n, tn)
    n_k = pl.cdiv(hw, ts)
    group = ts if ts < _LANE else _LANE

    kernel = functools.partial(_gap_kernel, hw=hw, ts=ts, n_k=n_k,
                               group=group, inv_hw=1.0 / hw)

    cost = pl.CostEstimate(
        flops=n * c * hw + 6 * n * c,
        transcendentals=n,
        bytes_accessed=n * c * hw * itemsize + n * c * itemsize,
    )

    return pl.pallas_call(
        kernel,
        out_shape=jax.ShapeDtypeStruct((n, c), x.dtype),
        grid_spec=pltpu.PrefetchScalarGridSpec(
            num_scalar_prefetch=0,
            grid=(n_row, n_k),
            in_specs=[pl.BlockSpec((tn, c, ts), lambda i, k: (i, 0, k))],
            out_specs=pl.BlockSpec((tn, c), lambda i, k: (i, 0)),
            scratch_shapes=[pltpu.VMEM((tn, c, group), jnp.float32)],
        ),
        compiler_params=pltpu.CompilerParams(
            dimension_semantics=("parallel", "arbitrary"),
            vmem_limit_bytes=vmem_limit_bytes),
        cost_estimate=cost,
    )(x3)


def gap_pool_ref(x):
    """Pure-JAX reference matching the PyTorch module."""
    pooled = jnp.mean(x.astype(jnp.float32), axis=(-2, -1))
    norm = jnp.sqrt(jnp.sum(pooled * pooled, axis=1, keepdims=True))
    return (pooled / jnp.maximum(norm, _F_NORMALIZE_EPS)).astype(x.dtype)


if __name__ == "__main__":
    # Parameter from __init__ (unused in the forward pass, kept for parity).
    p_param = jnp.ones((1,), dtype=jnp.float32) * 3.0  # noqa: F841

    key = jax.random.PRNGKey(0)

    # Small shape consistent with the module spec (single block, full spatial coverage).
    x = jax.random.normal(key, (2, 4, 16, 16), dtype=jnp.float32)
    out = jax.block_until_ready(gap_pool(x))
    ref = gap_pool_ref(x)
    assert out.shape == (2, 4), out.shape
    assert jnp.allclose(out, ref, atol=1e-5, rtol=1e-5), "mismatch vs reference"

    # Tiny budget: exercises 2 row blocks + multi spatial steps + masked tail tile.
    x2 = jax.random.normal(jax.random.PRNGKey(0), (16, 8, 32, 32), dtype=jnp.float32)
    out2 = jax.block_until_ready(gap_pool(x2, vmem_budget_bytes=256 * 1024))
    ref2 = gap_pool_ref(x2)
    assert out2.shape == (16, 8), out2.shape
    assert jnp.allclose(out2, ref2, atol=1e-5, rtol=1e-5), "mismatch (tiled path)"

    # hw < 128 path (7x7 feature maps; spatial tile == full extent).
    x3 = jax.random.normal(jax.random.PRNGKey(0), (2, 8, 7, 7), dtype=jnp.float32)
    out3 = jax.block_until_ready(gap_pool(x3))
    ref3 = gap_pool_ref(x3)
    assert out3.shape == (2, 8), out3.shape
    assert jnp.allclose(out3, ref3, atol=1e-5, rtol=1e-5), "mismatch (small-hw path)"

    print("KERNEL_OK")
</pallas_src>

<mosaic_0001>
module attributes {stable_mosaic.version = 11 : i64} {
  func.func @_gap_kernel(%arg0: i32, %arg1: i32, %arg2: memref<2x4x256xf32, #tpu.memory_space<vmem>>, %arg3: memref<2x4xf32, #tpu.memory_space<vmem>>, %arg4: memref<2x4x128xf32, #tpu.memory_space<vmem>>) attributes {dimension_semantics = [#tpu.dimension_semantics<parallel>, #tpu.dimension_semantics<arbitrary>], iteration_bounds = array<i64: 1, 1>, scalar_prefetch = 0 : i64, scratch_operands = 1 : i64, tpu.core_type = #tpu.core_type<tc>, window_params = [{transform_indices = @transform_0, window_bounds = array<i64: 2, 4, 256>}, {transform_indices = @transform_1, window_bounds = array<i64: 2, 4>}]} {
    %c0_i32 = arith.constant 0 : i32
    %0 = arith.cmpi eq, %arg1, %c0_i32 : i32
    %1 = arith.extui %0 : i1 to i32
    %c0_i32_0 = arith.constant 0 : i32
    %2 = arith.cmpi ne, %1, %c0_i32_0 : i32
    scf.if %2 {
      %cst_14 = arith.constant 0.000000e+00 : f32
      %16 = vector.broadcast %cst_14 : f32 to vector<2x4x128xf32>
      %c0_15 = arith.constant 0 : index
      %c0_16 = arith.constant 0 : index
      %c0_17 = arith.constant 0 : index
      %17 = vector.load %arg4[%c0_15, %c0_16, %c0_17] : memref<2x4x128xf32, #tpu.memory_space<vmem>>, vector<2x4x128xf32>
      tpu.vector_store %arg4[%c0_15, %c0_16, %c0_17], %16 {strides = array<i32>} : memref<2x4x128xf32, #tpu.memory_space<vmem>>, vector<2x4x128xf32>,
    } else {
    }
    %cst = arith.constant 0.000000e+00 : f32
    %3 = vector.broadcast %cst : f32 to vector<2x4x128xf32>
    %cst_1 = arith.constant 0.000000e+00 : f32
    %4 = vector.broadcast %cst_1 : f32 to vector<2x4x128xf32>
    %c0 = arith.constant 0 : index
    %c0_2 = arith.constant 0 : index
    %c0_3 = arith.constant 0 : index
    %5 = vector.load %arg2[%c0, %c0_2, %c0_3] : memref<2x4x256xf32, #tpu.memory_space<vmem>>, vector<2x4x128xf32>
    %6 = arith.addf %3, %5 : vector<2x4x128xf32>
    %c0_4 = arith.constant 0 : index
    %c0_5 = arith.constant 0 : index
    %c128 = arith.constant 128 : index
    %7 = vector.load %arg2[%c0_4, %c0_5, %c128] : memref<2x4x256xf32, #tpu.memory_space<vmem>>, vector<2x4x128xf32>
    %8 = arith.addf %4, %7 : vector<2x4x128xf32>
    %9 = arith.addf %6, %8 : vector<2x4x128xf32>
    %c0_6 = arith.constant 0 : index
    %c0_7 = arith.constant 0 : index
    %c0_8 = arith.constant 0 : index
    %10 = vector.load %arg4[%c0_6, %c0_7, %c0_8] : memref<2x4x128xf32, #tpu.memory_space<vmem>>, vector<2x4x128xf32>
    %11 = arith.addf %10, %9 : vector<2x4x128xf32>
    %c0_9 = arith.constant 0 : index
    %c0_10 = arith.constant 0 : index
    %c0_11 = arith.constant 0 : index
    %12 = vector.load %arg4[%c0_9, %c0_10, %c0_11] : memref<2x4x128xf32, #tpu.memory_space<vmem>>, vector<2x4x128xf32>
    tpu.vector_store %arg4[%c0_9, %c0_10, %c0_11], %11 {strides = array<i32>} : memref<2x4x128xf32, #tpu.memory_space<vmem>>, vector<2x4x128xf32>,
    %c0_i32_12 = arith.constant 0 : i32
    %13 = arith.cmpi eq, %arg1, %c0_i32_12 : i32
    %14 = arith.extui %13 : i1 to i32
    %c0_i32_13 = arith.constant 0 : i32
    %15 = arith.cmpi ne, %14, %c0_i32_13 : i32
    scf.if %15 {
      %c0_14 = arith.constant 0 : index
      %c0_15 = arith.constant 0 : index
      %c0_16 = arith.constant 0 : index
      %16 = vector.load %arg4[%c0_14, %c0_15, %c0_16] : memref<2x4x128xf32, #tpu.memory_space<vmem>>, vector<2x4x128xf32>
      %cst_17 = arith.constant dense<0.000000e+00> : vector<2x4xf32>
      %17 = vector.multi_reduction <add>, %16, %cst_17 [2] : vector<2x4x128xf32> to vector<2x4xf32>
      %cst_18 = arith.constant 3.906250e-03 : f32
      %18 = vector.broadcast %cst_18 : f32 to vector<2x4xf32>
      %19 = arith.mulf %17, %18 : vector<2x4xf32>
      %20 = arith.mulf %19, %19 : vector<2x4xf32>
      %cst_19 = arith.constant dense<0.000000e+00> : vector<2xf32>
      %21 = vector.multi_reduction <add>, %20, %cst_19 [1] : vector<2x4xf32> to vector<2xf32>
      %22 = vector.shape_cast %21 : vector<2xf32> to vector<2x1xf32>
      %cst_20 = arith.constant 1.000000e-24 : f32
      %23 = vector.broadcast %cst_20 : f32 to vector<2x1xf32>
      %24 = arith.maximumf %22, %23 : vector<2x1xf32>
      %25 = math.rsqrt %24 : vector<2x1xf32>
      %26 = vector.broadcast %25 : vector<2x1xf32> to vector<2x4xf32>
      %27 = arith.mulf %19, %26 : vector<2x4xf32>
      %c0_21 = arith.constant 0 : index
      %c0_22 = arith.constant 0 : index
      %28 = vector.load %arg3[%c0_21, %c0_22] : memref<2x4xf32, #tpu.memory_space<vmem>>, vector<2x4xf32>
      tpu.vector_store %arg3[%c0_21, %c0_22], %27 {strides = array<i32>} : memref<2x4xf32, #tpu.memory_space<vmem>>, vector<2x4xf32>,
    } else {
    }
    return
  }
  func.func @transform_0(%arg0: i32, %arg1: i32) -> (i32, i32, i32) {
    %c0_i32 = arith.constant 0 : i32
    %c0_i32_0 = arith.constant 0 : i32
    return %arg0, %c0_i32, %arg1 : i32, i32, i32
  }
  func.func @transform_1(%arg0: i32, %arg1: i32) -> (i32, i32) {
    %c0_i32 = arith.constant 0 : i32
    %c0_i32_0 = arith.constant 0 : i32
    return %arg0, %c0_i32 : i32, i32
  }
}

</mosaic_0001>

<bundles_post_ra>
// kernel: tpu_custom_call.1
= control target key start
LH: loop header
LB: loop body
LE: loop exit
PB: predicated region body
PF: predicated region fallthrough
CT: control target
= control target key end

     0   :  { %6 = vsyncpa [#allocation4], 0  ;;  %s231_s0 = inlined_call_operand.hbm [shape: f32[2,4,256], index: 0, kind: input, shape index: {}]   ;;  %s232_s1 = inlined_call_operand.hbm [shape: f32[2,4], index: 1, kind: output, shape index: {}]  }
   0x1   :  { %7 = vsyncpa [#allocation5], 0  ;;  %s187_s6 = smov [#allocation3]   ;;  %s139_s10 = scalar_lea.hbm %s231_s0, 256 }
   0x2   :  { %s13_s7 = sshll.u32 %s187_s6, 4  ;;  %p140_p0 = scmp.ne.s32.totalorder %s231_s0, %s139_s10  ;;  %s14_s7 = int_to_ptr.vmem [resolvable:$true] %s13_s7 }
   0x3   :  { %p143_p1 = scmp.lt.u32.totalorder %s139_s10, %s231_s0 }
   0x5   :  { %p145_p2 = pnand %p143_p1, %p140_p0 }
   0x7   :  { %148 = shalt.err (!%p145_p2)
}
   0x8   :  { %s149_s15 = scalar_lea.vmem %s14_s7, 256  ;;  %p154_p4 = scmp.lt.s32.totalorder %s14_s7, %s14_s7 }
   0x9   :  { %p150_p3 = scmp.ne.s32.totalorder %s14_s7, %s149_s15  ;;  %p155_p5 = scmp.lt.s32.totalorder %s149_s15, %s149_s15 }
   0xb   :  { %p156_p6 = por %p155_p5, %p154_p4 }
   0xd   :  { %p157_p7 = pnand %p156_p6, %p150_p3 }
   0xf   :  { %160 = shalt.err (!%p157_p7)
}
  0x10   :  { %s188_s16 = smov 128   ;;  %s189_s17 = smov 8  }
  0x11   :  { %19 = dma.hbm_to_vmem [thread:$0]  %s231_s0, 256, %s14_s7, [#allocation4], %s188_s16, %s188_s16, %s189_s17  }
  0x12   :  { %183 = dma.done.wait [#allocation4], 256  }
  0x13   :  { %184 = vsyncadd [#allocation4], 4294967040  ;;  %v190_v0 = vmov 0.0   ;;  %v29_v1 = vld [vmem:[#allocation3] sm:$0xf]  ;;  %vm50_vm0 = vcmask 1043456   ;;  %v63_v15 = vlaneseq }
  0x14   :  { %27 = vst [vmem:[#allocation2] sm:$0xf] %v190_v0  ;;  %28 = vst [vmem:[#allocation2 + $0x4] sm:$0xf] %v190_v0  ;;  %v33_v2 = vld [vmem:[#allocation3 + $0x4] sm:$0xf] }
  0x15   :  { %v30_v3 = vld [vmem:[#allocation3 + $0x8] sm:$0xf]  ;;  %v37_v4 = vadd.f32 %v33_v2, %v29_v1  ;;  %v34_v6 = vld [vmem:[#allocation3 + $0xc] sm:$0xf]  ;;  %v64_v17 = vand.u32 127, %v63_v15  ;;  %v66_v18 = vshrl.u32 %v63_v15, 7 }
  0x16   :  { %v38_v8 = vadd.f32 %v34_v6, %v30_v3  ;;  %vm73_vm1 = vcmask 1041409   ;;  %vm76_vm2 = vcmask 25600   ;;  %v191_v29 = vmov 0   ;;  %s192_s0 = smov [#allocation6]  }
  0x17   :  { %v67_v21 = vsub.s32 %v64_v17, %v66_v18  ;;  %136 = vset.pattern.permute.xlu0 %v191_v29  ;;  %135 = vset.pattern.permute.xlu1 %v191_v29  ;;  %v89_v32 = vsub.s32 1, %v66_v18  ;;  %v85_v33 = vsub.s32 0, %v66_v18  ;;  %s120_s20 = sshll.u32 %s192_s0, 4  ;;  %s121_s20 = int_to_ptr.vmem [resolvable:$true] %s120_s20 }
  0x18   :  { %s161_s21 = scalar_lea.vmem %s121_s20, 32  ;;  %p166_p9 = scmp.lt.s32.totalorder %s121_s20, %s121_s20 }
  0x19   :  { %p162_p8 = scmp.ne.s32.totalorder %s121_s20, %s161_s21  ;;  %p167_p10 = scmp.lt.s32.totalorder %s161_s21, %s161_s21 }
  0x1b   :  { %v39_v5 = vld [vmem:[#allocation2] sm:$0xf]  ;;  %v40_v7 = vld [vmem:[#allocation2 + $0x4] sm:$0xf]  ;;  %p168_p11 = por %p167_p10, %p166_p9 }
  0x1c   :  { %v41_v9 = vadd.f32 %v39_v5, %v37_v4  ;;  %v42_v10 = vadd.f32 %v40_v7, %v38_v8 }
  0x1d   :  { %p169_p12 = pnand %p168_p11, %p162_p8 }
  0x1e   :  { %43 = vst [vmem:[#allocation2] sm:$0xf] %v41_v9  ;;  %44 = vst [vmem:[#allocation2 + $0x4] sm:$0xf] %v42_v10 }
  0x25   :  { %v48_v11 = vld [vmem:[#allocation2] sm:$0xf]  ;;  %v49_v13 = vld [vmem:[#allocation2 + $0x4] sm:$0xf] }
  0x26   :  { %v51_v12 = vsel %vm50_vm0, %v48_v11, 0.0  ;;  %v54_v14 = vsel %vm50_vm0, %v49_v13, 0.0 }
  0x27   :  { %52 = vadd.xlane.f32.xlu0 %v51_v12 }
  0x2b   :  { %55 = vadd.xlane.f32.xlu0 %v54_v14 }
  0xb4   :  { %v53_v16 = vpop.xlane.xlu0 %52 }
  0xb5   :  { %v57_v19 = vmul.f32 0.00390625, %v53_v16 }
  0xb7   :  { %v59_v22 = vmul.f32 %v57_v19, %v57_v19 }
  0xb8   :  { %v56_v20 = vpop.xlane.xlu0 %55 }
  0xb9   :  { %v58_v23 = vmul.f32 0.00390625, %v56_v20  ;;  %v68_v25 = vrot.slane %v59_v22, %v67_v21 }
  0xbb   :  { %v60_v24 = vmul.f32 %v58_v23, %v58_v23 }
  0xbd   :  { %v72_v26 = vrot.slane %v60_v24, %v67_v21 }
  0xbf   :  { %v74_v27 = vsel %vm73_vm1, %v72_v26, %v68_v25 }
  0xc0   :  { %v77_v28 = vsel %vm76_vm2, %v74_v27, 0.0 }
  0xc1   :  { %78 = vadd.xlane.f32.xlu1 %v77_v28 }
 0x14e   :  { %v79_v30 = vpop.xlane.xlu1 %78 }
 0x14f   :  { %v80_v31 = vmax.f32 %v79_v30, 1e-24 }
 0x151   :  { %137 = vrsqrt.f32 %v80_v31 }
 0x15b   :  { %v138_v34 = vpop.eup %137 }
 0x15c   :  { %v90_v35 = vrot.slane %v138_v34, %v89_v32  ;;  %v86_v36 = vrot.slane %v138_v34, %v85_v33 }
 0x15e   :  { %v94_v37 = vmul.f32 %v90_v35, %v58_v23  ;;  %v93_v38 = vmul.f32 %v86_v36, %v57_v19 }
 0x160   :  { %101 = vperm.xlu0 %136, %v94_v37   ;;  %98 = vperm.xlu1 %135, %v93_v38  }
 0x1df   :  { %v102_v39 = vpop.permute.xlu0 %101  ;;  %v99_v40 = vpop.permute.xlu1 %98 }
 0x1e0   :  { %v110_v41 = vrot.slane %v102_v39, %v67_v21  ;;  %v106_v42 = vrot.slane %v99_v40, %v67_v21 }
 0x1e2   :  { %v111_v43 = vsel %vm73_vm1, %v110_v41, %v106_v42 }
 0x1e3   :  { %113 = vst.msk [vmem:[#allocation6] sm:$0x3] %vm76_vm2, %v111_v43 }
 0x1e4   :  { %172 = shalt.err (!%p169_p12)
}
 0x1e5   :  { %s173_s24 = scalar_lea.hbm %s232_s1, 32 }
 0x1e6   :  { %p174_p13 = scmp.ne.s32.totalorder %s232_s1, %s173_s24  ;;  %p177_p0 = scmp.lt.u32.totalorder %s173_s24, %s232_s1 }
 0x1e8   :  { %p179_p1 = pnand %p177_p0, %p174_p13 }
 0x1ea   :  { %182 = shalt.err (!%p179_p1)
}
 0x1eb   :  { %123 = dma.vmem_to_hbm [thread:$0]  %s121_s20, 32, %s232_s1, [#allocation5]  }
 0x1ec   :  { %185 = dma.done.wait [#allocation5], 32  }
 0x1ed   :  { %186 = vsyncadd [#allocation5], 4294967264 }
 0x1ee   :  { %127 = vsyncpa [#allocation4], 1 }
 0x1ef   :  { %128 = vsyncpa [#allocation5], 1 }

</bundles_post_ra>
